<compile_context>
chip_gen: v7x
topology: tpu7x:2x2x1
jax: 0.10.0
libtpu: 0.0.40
codegen_flags: <defaults>
</compile_context>

<pallas_src>
import functools

import jax
import jax.numpy as jnp
from jax.experimental import pallas as pl
from jax.experimental.pallas import tpu as pltpu

EPS = 1e-5
NUM_SCALARS = 5  # [c_m, c_c, a_m, a_c, c_out]


def _network2_kernel(x_ref, feat_ref, out_ref, *, D):
    # x_ref   : (D, B)  f32 -- rows = features (meta rows first, then config),
    #                          columns = batch (lane-dense).
    # feat_ref: (Dp, 3) f32 -- col0 = gamma_m*w1m (zero outside meta rows),
    #                          col1 = gamma_c*w1c (zero outside config rows),
    #                          col2 rows 0..4 = [c_m, c_c, a_m, a_c, c_out].
    # out_ref : (1, B)  f32 -- lane-dense output (batch on lanes).
    B = x_ref.shape[1]
    inv_b = jnp.float32(1.0 / B)

    x = x_ref[...]
    feat = feat_ref[...]
    gw_m = feat[:D, 0:1]            # (D, 1) folded meta weights
    gw_c = feat[:D, 1:2]            # (D, 1) folded config weights
    c_m = feat[0:1, 2:3]            # scalars kept as (1,1) tiles (pure broadcasts)
    c_c = feat[1:2, 2:3]
    a_m = feat[2:3, 2:3]
    a_c = feat[3:4, 2:3]
    c_out = feat[4:5, 2:3]

    def bn_normalize(v):
        # Per-row (per-feature) training-mode BN without affine (affine is
        # folded into the weights).  Shifted single-pass batch statistics with
        # pivot = batch element 0 (shift-invariant, numerically stable).
        d = v - v[:, 0:1]
        s1 = jnp.sum(d, axis=1, keepdims=True) * inv_b
        s2 = jnp.sum(d * d, axis=1, keepdims=True) * inv_b
        var = jnp.maximum(s2 - s1 * s1, 0.0)            # biased batch variance
        return (d - s1) * jax.lax.rsqrt(var + EPS)      # == (v - mu)/sqrt(var+eps)

    # One fused BN over all D feature rows (meta + config share stats pass).
    xn = bn_normalize(x)                                # (D, B)

    # 1-wide linears (BN affine + bias folded) as VPU mul + sublane reduce.
    h_m = jnp.maximum(jnp.sum(xn * gw_m, axis=0, keepdims=True) + c_m, 0.0)  # (1, B)
    h_c = jnp.maximum(jnp.sum(xn * gw_c, axis=0, keepdims=True) + c_c, 0.0)  # (1, B)

    # cat((meta, config), 1) -> BatchNorm1d(2) -> Linear(2, 1), expressed per
    # column (no concat / relayout) with gamma_cat, beta_cat, fc2 folded into
    # a_m, a_c, c_out.
    out = a_m * bn_normalize(h_m) + a_c * bn_normalize(h_c) + c_out          # (1, B)
    out_ref[...] = out.astype(out_ref.dtype)


def pack_params(params, config_dim, meta_dim):
    """Fold BN affine params + biases into the linears and pack everything into
    a single (Dp, 3) f32 slab: two weight columns + one scalar column."""
    Dm, Dc = meta_dim, config_dim
    D = Dm + Dc
    Dp = max(D, NUM_SCALARS)

    w1m = jnp.reshape(params["w1m"], (-1,)).astype(jnp.float32)   # (Dm,)
    w1c = jnp.reshape(params["w1c"], (-1,)).astype(jnp.float32)   # (Dc,)
    w2 = jnp.reshape(params["w2"], (-1,)).astype(jnp.float32)     # (2,) [meta, config]

    gw_m = params["gamma_m"].astype(jnp.float32) * w1m
    gw_c = params["gamma_c"].astype(jnp.float32) * w1c
    c_m = jnp.sum(params["beta_m"].astype(jnp.float32) * w1m) + jnp.reshape(params["b1m"], ())
    c_c = jnp.sum(params["beta_c"].astype(jnp.float32) * w1c) + jnp.reshape(params["b1c"], ())

    gcat = params["gamma_cat"].astype(jnp.float32)                # [meta, config]
    bcat = params["beta_cat"].astype(jnp.float32)
    a_m = w2[0] * gcat[0]
    a_c = w2[1] * gcat[1]
    c_out = w2[0] * bcat[0] + w2[1] * bcat[1] + jnp.reshape(params["b2"], ())

    col_m = jnp.zeros((Dp,), jnp.float32).at[:Dm].set(gw_m)       # meta rows first
    col_c = jnp.zeros((Dp,), jnp.float32).at[Dm:D].set(gw_c)      # then config rows
    col_s = jnp.zeros((Dp,), jnp.float32).at[:NUM_SCALARS].set(
        jnp.stack([c_m, c_c, a_m, a_c, c_out]))
    return jnp.stack([col_m, col_c, col_s], axis=1)               # (Dp, 3)


def network2_forward(config, meta, feat):
    """config: (B, Dc) f32, meta: (B, Dm) f32, feat from pack_params -> (B, 1) f32."""
    B, Dc = config.shape
    Dm = meta.shape[1]
    D = Dm + Dc

    # Wrapper-side layout plumbing only: one fused input, features on sublanes,
    # batch on lanes (lane-dense output + natural batch-tiling axis later).
    x_t = jnp.concatenate([meta, config], axis=1).T.astype(jnp.float32)   # (D, B)

    kernel = functools.partial(_network2_kernel, D=D)
    vmem = pl.BlockSpec(memory_space=pltpu.MemorySpace.VMEM)
    out = pl.pallas_call(
        kernel,
        out_shape=jax.ShapeDtypeStruct((1, B), jnp.float32),
        in_specs=[vmem, vmem],
        out_specs=vmem,
    )(x_t, feat)
    return out.reshape(B, 1)


def init_params(key, config_dim, meta_dim):
    """Parameter init mirroring nn.Linear / nn.BatchNorm1d shapes.

    Linear weights are stored transposed vs. PyTorch: (in_features, out_features).
    """
    k1, k2, k3, k4, k5, k6 = jax.random.split(key, 6)

    def linear_init(kw, kb, fan_in, fan_out):
        bound = 1.0 / jnp.sqrt(jnp.float32(fan_in))
        w = jax.random.uniform(kw, (fan_in, fan_out), jnp.float32, -bound, bound)
        b = jax.random.uniform(kb, (1, fan_out), jnp.float32, -bound, bound)
        return w, b

    w1m, b1m = linear_init(k1, k2, meta_dim, 1)     # fc1_m
    w1c, b1c = linear_init(k3, k4, config_dim, 1)   # fc1_c
    w2, b2 = linear_init(k5, k6, 2, 1)              # fc2

    return dict(
        w1m=w1m, b1m=b1m,
        w1c=w1c, b1c=b1c,
        w2=w2, b2=b2,
        # BatchNorm1d affine params at PyTorch defaults: gamma=1, beta=0
        gamma_m=jnp.ones((meta_dim,), jnp.float32),
        beta_m=jnp.zeros((meta_dim,), jnp.float32),
        gamma_c=jnp.ones((config_dim,), jnp.float32),
        beta_c=jnp.zeros((config_dim,), jnp.float32),
        gamma_cat=jnp.ones((2,), jnp.float32),
        beta_cat=jnp.zeros((2,), jnp.float32),
    )


def _reference_forward(config, meta, params):
    """Pure-JAX reference matching PyTorch training-mode forward (two-pass BN)."""
    def bn(x, gamma, beta):
        mu = jnp.mean(x, axis=0, keepdims=True)
        var = jnp.mean((x - mu) ** 2, axis=0, keepdims=True)
        return (x - mu) * jax.lax.rsqrt(var + EPS) * gamma.reshape(1, -1) + beta.reshape(1, -1)

    m = bn(meta, params["gamma_m"], params["beta_m"])
    m = jnp.maximum(m @ params["w1m"] + params["b1m"], 0.0)
    c = bn(config, params["gamma_c"], params["beta_c"])
    c = jnp.maximum(c @ params["w1c"] + params["b1c"], 0.0)
    x = jnp.concatenate([m, c], axis=1)
    x = bn(x, params["gamma_cat"], params["beta_cat"])
    return x @ params["w2"] + params["b2"]


if __name__ == "__main__":
    B, config_dim, meta_dim = 8, 16, 12

    key = jax.random.PRNGKey(0)
    k_cfg, k_meta, k_params = jax.random.split(key, 3)
    config = jax.random.normal(k_cfg, (B, config_dim), jnp.float32)
    meta = jax.random.normal(k_meta, (B, meta_dim), jnp.float32)
    params = init_params(k_params, config_dim, meta_dim)

    feat = pack_params(params, config_dim, meta_dim)   # fold + pack once, reuse
    out = network2_forward(config, meta, feat)
    jax.block_until_ready(out)

    assert out.shape == (B, 1) and out.dtype == jnp.float32
    ref = _reference_forward(config, meta, params)
    assert jnp.allclose(out, ref, rtol=5e-3, atol=5e-4), (out, ref)
    print("KERNEL_OK")
</pallas_src>

<mosaic_0001>
module attributes {stable_mosaic.version = 11 : i64} {
  func.func @_network2_kernel(%arg0: memref<28x8xf32, #tpu.memory_space<vmem>>, %arg1: memref<28x3xf32, #tpu.memory_space<vmem>>, %arg2: memref<1x8xf32, #tpu.memory_space<vmem>>) attributes {dimension_semantics = [], scalar_prefetch = 0 : i64, scratch_operands = 0 : i64, tpu.core_type = #tpu.core_type<tc>} {
    %c0 = arith.constant 0 : index
    %c0_0 = arith.constant 0 : index
    %0 = vector.load %arg0[%c0, %c0_0] : memref<28x8xf32, #tpu.memory_space<vmem>>, vector<28x8xf32>
    %c0_1 = arith.constant 0 : index
    %c0_2 = arith.constant 0 : index
    %1 = vector.load %arg1[%c0_1, %c0_2] : memref<28x3xf32, #tpu.memory_space<vmem>>, vector<28x3xf32>
    %2 = vector.extract_strided_slice %1 {offsets = [0, 0], sizes = [28, 1], strides = [1, 1]} : vector<28x3xf32> to vector<28x1xf32>
    %3 = vector.extract_strided_slice %1 {offsets = [0, 1], sizes = [28, 1], strides = [1, 1]} : vector<28x3xf32> to vector<28x1xf32>
    %4 = vector.extract_strided_slice %1 {offsets = [0, 2], sizes = [1, 1], strides = [1, 1]} : vector<28x3xf32> to vector<1x1xf32>
    %5 = vector.extract_strided_slice %1 {offsets = [1, 2], sizes = [1, 1], strides = [1, 1]} : vector<28x3xf32> to vector<1x1xf32>
    %6 = vector.extract_strided_slice %1 {offsets = [2, 2], sizes = [1, 1], strides = [1, 1]} : vector<28x3xf32> to vector<1x1xf32>
    %7 = vector.extract_strided_slice %1 {offsets = [3, 2], sizes = [1, 1], strides = [1, 1]} : vector<28x3xf32> to vector<1x1xf32>
    %8 = vector.extract_strided_slice %1 {offsets = [4, 2], sizes = [1, 1], strides = [1, 1]} : vector<28x3xf32> to vector<1x1xf32>
    %9 = vector.extract_strided_slice %0 {offsets = [0, 0], sizes = [28, 1], strides = [1, 1]} : vector<28x8xf32> to vector<28x1xf32>
    %10 = vector.broadcast %9 : vector<28x1xf32> to vector<28x8xf32>
    %11 = arith.subf %0, %10 : vector<28x8xf32>
    %cst = arith.constant dense<0.000000e+00> : vector<28xf32>
    %12 = vector.multi_reduction <add>, %11, %cst [1] : vector<28x8xf32> to vector<28xf32>
    %13 = vector.shape_cast %12 : vector<28xf32> to vector<28x1xf32>
    %cst_3 = arith.constant 1.250000e-01 : f32
    %14 = vector.broadcast %cst_3 : f32 to vector<28x1xf32>
    %15 = arith.mulf %13, %14 : vector<28x1xf32>
    %16 = arith.mulf %11, %11 : vector<28x8xf32>
    %cst_4 = arith.constant dense<0.000000e+00> : vector<28xf32>
    %17 = vector.multi_reduction <add>, %16, %cst_4 [1] : vector<28x8xf32> to vector<28xf32>
    %18 = vector.shape_cast %17 : vector<28xf32> to vector<28x1xf32>
    %cst_5 = arith.constant 1.250000e-01 : f32
    %19 = vector.broadcast %cst_5 : f32 to vector<28x1xf32>
    %20 = arith.mulf %18, %19 : vector<28x1xf32>
    %21 = arith.mulf %15, %15 : vector<28x1xf32>
    %22 = arith.subf %20, %21 : vector<28x1xf32>
    %cst_6 = arith.constant 0.000000e+00 : f32
    %23 = vector.broadcast %cst_6 : f32 to vector<28x1xf32>
    %24 = arith.maximumf %22, %23 : vector<28x1xf32>
    %25 = vector.broadcast %15 : vector<28x1xf32> to vector<28x8xf32>
    %26 = arith.subf %11, %25 : vector<28x8xf32>
    %cst_7 = arith.constant 9.99999974E-6 : f32
    %27 = vector.broadcast %cst_7 : f32 to vector<28x1xf32>
    %28 = arith.addf %24, %27 : vector<28x1xf32>
    %29 = math.rsqrt %28 : vector<28x1xf32>
    %30 = vector.broadcast %29 : vector<28x1xf32> to vector<28x8xf32>
    %31 = arith.mulf %26, %30 : vector<28x8xf32>
    %32 = vector.broadcast %2 : vector<28x1xf32> to vector<28x8xf32>
    %33 = arith.mulf %31, %32 : vector<28x8xf32>
    %cst_8 = arith.constant dense<0.000000e+00> : vector<8xf32>
    %34 = vector.multi_reduction <add>, %33, %cst_8 [0] : vector<28x8xf32> to vector<8xf32>
    %35 = vector.shape_cast %34 : vector<8xf32> to vector<1x8xf32>
    %36 = vector.broadcast %4 : vector<1x1xf32> to vector<1x8xf32>
    %37 = arith.addf %35, %36 : vector<1x8xf32>
    %cst_9 = arith.constant 0.000000e+00 : f32
    %38 = vector.broadcast %cst_9 : f32 to vector<1x8xf32>
    %39 = arith.maximumf %37, %38 : vector<1x8xf32>
    %40 = vector.broadcast %3 : vector<28x1xf32> to vector<28x8xf32>
    %41 = arith.mulf %31, %40 : vector<28x8xf32>
    %cst_10 = arith.constant dense<0.000000e+00> : vector<8xf32>
    %42 = vector.multi_reduction <add>, %41, %cst_10 [0] : vector<28x8xf32> to vector<8xf32>
    %43 = vector.shape_cast %42 : vector<8xf32> to vector<1x8xf32>
    %44 = vector.broadcast %5 : vector<1x1xf32> to vector<1x8xf32>
    %45 = arith.addf %43, %44 : vector<1x8xf32>
    %cst_11 = arith.constant 0.000000e+00 : f32
    %46 = vector.broadcast %cst_11 : f32 to vector<1x8xf32>
    %47 = arith.maximumf %45, %46 : vector<1x8xf32>
    %48 = vector.extract_strided_slice %39 {offsets = [0, 0], sizes = [1, 1], strides = [1, 1]} : vector<1x8xf32> to vector<1x1xf32>
    %49 = vector.broadcast %48 : vector<1x1xf32> to vector<1x8xf32>
    %50 = arith.subf %39, %49 : vector<1x8xf32>
    %cst_12 = arith.constant dense<0.000000e+00> : vector<1xf32>
    %51 = vector.multi_reduction <add>, %50, %cst_12 [1] : vector<1x8xf32> to vector<1xf32>
    %52 = vector.shape_cast %51 : vector<1xf32> to vector<1x1xf32>
    %cst_13 = arith.constant 1.250000e-01 : f32
    %53 = vector.broadcast %cst_13 : f32 to vector<1x1xf32>
    %54 = arith.mulf %52, %53 : vector<1x1xf32>
    %55 = arith.mulf %50, %50 : vector<1x8xf32>
    %cst_14 = arith.constant dense<0.000000e+00> : vector<1xf32>
    %56 = vector.multi_reduction <add>, %55, %cst_14 [1] : vector<1x8xf32> to vector<1xf32>
    %57 = vector.shape_cast %56 : vector<1xf32> to vector<1x1xf32>
    %cst_15 = arith.constant 1.250000e-01 : f32
    %58 = vector.broadcast %cst_15 : f32 to vector<1x1xf32>
    %59 = arith.mulf %57, %58 : vector<1x1xf32>
    %60 = arith.mulf %54, %54 : vector<1x1xf32>
    %61 = arith.subf %59, %60 : vector<1x1xf32>
    %cst_16 = arith.constant 0.000000e+00 : f32
    %62 = vector.broadcast %cst_16 : f32 to vector<1x1xf32>
    %63 = arith.maximumf %61, %62 : vector<1x1xf32>
    %64 = vector.broadcast %54 : vector<1x1xf32> to vector<1x8xf32>
    %65 = arith.subf %50, %64 : vector<1x8xf32>
    %cst_17 = arith.constant 9.99999974E-6 : f32
    %66 = vector.broadcast %cst_17 : f32 to vector<1x1xf32>
    %67 = arith.addf %63, %66 : vector<1x1xf32>
    %68 = math.rsqrt %67 : vector<1x1xf32>
    %69 = vector.broadcast %68 : vector<1x1xf32> to vector<1x8xf32>
    %70 = arith.mulf %65, %69 : vector<1x8xf32>
    %71 = vector.broadcast %6 : vector<1x1xf32> to vector<1x8xf32>
    %72 = arith.mulf %71, %70 : vector<1x8xf32>
    %73 = vector.extract_strided_slice %47 {offsets = [0, 0], sizes = [1, 1], strides = [1, 1]} : vector<1x8xf32> to vector<1x1xf32>
    %74 = vector.broadcast %73 : vector<1x1xf32> to vector<1x8xf32>
    %75 = arith.subf %47, %74 : vector<1x8xf32>
    %cst_18 = arith.constant dense<0.000000e+00> : vector<1xf32>
    %76 = vector.multi_reduction <add>, %75, %cst_18 [1] : vector<1x8xf32> to vector<1xf32>
    %77 = vector.shape_cast %76 : vector<1xf32> to vector<1x1xf32>
    %cst_19 = arith.constant 1.250000e-01 : f32
    %78 = vector.broadcast %cst_19 : f32 to vector<1x1xf32>
    %79 = arith.mulf %77, %78 : vector<1x1xf32>
    %80 = arith.mulf %75, %75 : vector<1x8xf32>
    %cst_20 = arith.constant dense<0.000000e+00> : vector<1xf32>
    %81 = vector.multi_reduction <add>, %80, %cst_20 [1] : vector<1x8xf32> to vector<1xf32>
    %82 = vector.shape_cast %81 : vector<1xf32> to vector<1x1xf32>
    %cst_21 = arith.constant 1.250000e-01 : f32
    %83 = vector.broadcast %cst_21 : f32 to vector<1x1xf32>
    %84 = arith.mulf %82, %83 : vector<1x1xf32>
    %85 = arith.mulf %79, %79 : vector<1x1xf32>
    %86 = arith.subf %84, %85 : vector<1x1xf32>
    %cst_22 = arith.constant 0.000000e+00 : f32
    %87 = vector.broadcast %cst_22 : f32 to vector<1x1xf32>
    %88 = arith.maximumf %86, %87 : vector<1x1xf32>
    %89 = vector.broadcast %79 : vector<1x1xf32> to vector<1x8xf32>
    %90 = arith.subf %75, %89 : vector<1x8xf32>
    %cst_23 = arith.constant 9.99999974E-6 : f32
    %91 = vector.broadcast %cst_23 : f32 to vector<1x1xf32>
    %92 = arith.addf %88, %91 : vector<1x1xf32>
    %93 = math.rsqrt %92 : vector<1x1xf32>
    %94 = vector.broadcast %93 : vector<1x1xf32> to vector<1x8xf32>
    %95 = arith.mulf %90, %94 : vector<1x8xf32>
    %96 = vector.broadcast %7 : vector<1x1xf32> to vector<1x8xf32>
    %97 = arith.mulf %96, %95 : vector<1x8xf32>
    %98 = arith.addf %72, %97 : vector<1x8xf32>
    %99 = vector.broadcast %8 : vector<1x1xf32> to vector<1x8xf32>
    %100 = arith.addf %98, %99 : vector<1x8xf32>
    %c0_24 = arith.constant 0 : index
    %c0_25 = arith.constant 0 : index
    %101 = vector.load %arg2[%c0_24, %c0_25] : memref<1x8xf32, #tpu.memory_space<vmem>>, vector<1x8xf32>
    tpu.vector_store %arg2[%c0_24, %c0_25], %100 {strides = array<i32>} : memref<1x8xf32, #tpu.memory_space<vmem>>, vector<1x8xf32>,
    return
  }
}

</mosaic_0001>

<bundles_post_ra>
// kernel: tpu_custom_call.1
= control target key start
LH: loop header
LB: loop body
LE: loop exit
PB: predicated region body
PF: predicated region fallthrough
CT: control target
= control target key end

     0   :  { %v317_v2 = vmov 0   ;;  %s419_s0 = inlined_call_operand.vmem [shape: f32[28,8], index: 0, kind: input, shape index: {}]   ;;  %s420_s1 = inlined_call_operand.vmem [shape: f32[28,3], index: 1, kind: input, shape index: {}]   ;;  %s421_s2 = inlined_call_operand.hbm [shape: f32[1,8], index: 2, kind: output, shape index: {}]  }
   0x1   :  { %v14_v0 = vld [vmem:[%s419_s0 + $0x10] sm:$0xff]  ;;  %v12_v1 = vld [vmem:[%s419_s0] sm:$0xff]  ;;  %270 = vset.pattern.permute.xlu1 %v317_v2  ;;  %269 = vset.pattern.permute.xlu0 %v317_v2 }
   0x2   :  { %7 = vsyncpa [#allocation3], 0  ;;  %32 = vperm.xlu1 %270, %v14_v0   ;;  %22 = vperm.xlu0 %269, %v12_v1   ;;  %v15_v3 = vld [vmem:[%s419_s0 + $0x18] sm:$0xf]  ;;  %v13_v4 = vld [vmem:[%s419_s0 + $0x8] sm:$0xff]  ;;  %v318_v6 = vmov 1  }
   0x3   :  { %v16_v5 = vld [vmem:[%s420_s1] sm:$0xff]  ;;  %vm44_vm0 = vcmask 64512   ;;  %vm54_vm1 = vcmask 60416   ;;  %v17_v27 = vld [vmem:[%s420_s1 + $0x8] sm:$0xff]  ;;  %v18_v28 = vld [vmem:[%s420_s1 + $0x10] sm:$0xff]  ;;  %v319_v30 = vmov 2  }
   0x4   :  { %v19_v29 = vld [vmem:[%s420_s1 + $0x18] sm:$0xf]  ;;  %vm221_vm2 = vcmask 58369   ;;  %vm194_vm3 = vcmask 57344   ;;  %s320_s1 = smov [#allocation2]   ;;  %vm249_vm4 = vcmask 59394  }
   0x5   :  { %s257_s24 = sshll.u32 %s320_s1, 4  ;;  %s258_s24 = int_to_ptr.vmem [resolvable:$true] %s257_s24 }
   0x6   :  { %37 = vperm.xlu1 %270, %v15_v3   ;;  %27 = vperm.xlu0 %269, %v13_v4   ;;  %s293_s25 = scalar_lea.vmem %s258_s24, 16  ;;  %s297_s26 = scalar_lea.vmem %s258_s24, 32 }
   0x7   :  { %p294_p0 = scmp.ne.s32.totalorder %s258_s24, %s293_s25  ;;  %p298_p1 = scmp.lt.s32.totalorder %s258_s24, %s258_s24 }
   0x8   :  { %p299_p2 = scmp.lt.s32.totalorder %s297_s26, %s293_s25 }
   0xa   :  { %271 = vset.pattern.permute.xlu1 %v318_v6  ;;  %272 = vset.pattern.permute.xlu0 %v318_v6  ;;  %p300_p3 = por %p299_p2, %p298_p1 }
   0xb   :  { %154 = vperm.xlu1 %271, %v16_v5  }
   0xc   :  { %p301_p4 = pnand %p300_p3, %p294_p0 }
   0xf   :  { %273 = vset.pattern.permute.xlu1 %v317_v2 }
  0x81   :  { %v33_v7 = vpop.permute.xlu1 %32  ;;  %v23_v8 = vpop.permute.xlu0 %22 }
  0x82   :  { %v354_v9 = vsub.f32 %v14_v0, %v33_v7  ;;  %v356_v10 = vsub.f32 %v12_v1, %v23_v8 }
  0x84   :  { %v45_v11 = vsel %vm44_vm0, %v356_v10, 0.0  ;;  %v51_v15 = vsel %vm44_vm0, %v354_v9, 0.0  ;;  %v62_v21 = vmul.f32 %v356_v10, %v356_v10  ;;  %v64_v22 = vmul.f32 %v354_v9, %v354_v9 }
  0x85   :  { %v38_v12 = vpop.permute.xlu1 %37  ;;  %46 = vadd.xlane.f32.xlu0 %v45_v11  ;;  %v28_v13 = vpop.permute.xlu0 %27 }
  0x86   :  { %v360_v14 = vsub.f32 %v13_v4, %v28_v13  ;;  %v364_v16 = vsub.f32 %v15_v3, %v38_v12  ;;  %v66_v23 = vsel %vm44_vm0, %v62_v21, 0.0  ;;  %v72_v24 = vsel %vm44_vm0, %v64_v22, 0.0 }
  0x88   :  { %v48_v17 = vsel %vm44_vm0, %v360_v14, 0.0  ;;  %v63_v18 = vmul.f32 %v360_v14, %v360_v14  ;;  %v55_v19 = vsel %vm54_vm1, %v364_v16, 0.0  ;;  %v65_v25 = vmul.f32 %v364_v16, %v364_v16 }
  0x89   :  { %52 = vadd.xlane.f32.xlu0 %v51_v15  ;;  %49 = vadd.xlane.f32.xlu1 %v48_v17 }
  0x8a   :  { %v69_v20 = vsel %vm44_vm0, %v63_v18, 0.0  ;;  %v75_v26 = vsel %vm54_vm1, %v65_v25, 0.0  ;;  %v155_v31 = vpop.permute.xlu1 %154 }
  0x8d   :  { %56 = vadd.xlane.f32.xlu0 %v55_v19  ;;  %70 = vadd.xlane.f32.xlu1 %v69_v20 }
  0x91   :  { %67 = vadd.xlane.f32.xlu0 %v66_v23  ;;  %73 = vadd.xlane.f32.xlu1 %v72_v24 }
  0x95   :  { %76 = vadd.xlane.f32.xlu0 %v75_v26 }
  0xa2   :  { %112 = vperm.xlu1 %273, %v16_v5  }
  0xa6   :  { %117 = vperm.xlu1 %273, %v17_v27  }
  0xaa   :  { %274 = vset.pattern.permute.xlu1 %v318_v6 }
  0xab   :  { %162 = vperm.xlu1 %274, %v18_v28   ;;  %158 = vperm.xlu0 %272, %v17_v27  }
  0xaf   :  { %275 = vset.pattern.permute.xlu1 %v317_v2  ;;  %280 = vset.pattern.permute.xlu0 %v317_v2 }
  0xb0   :  { %122 = vperm.xlu1 %275, %v18_v28  }
  0xb4   :  { %276 = vset.pattern.permute.xlu1 %v318_v6 }
  0xb5   :  { %166 = vperm.xlu1 %276, %v19_v29  }
  0xb9   :  { %277 = vset.pattern.permute.xlu1 %v317_v2 }
  0xba   :  { %127 = vperm.xlu1 %277, %v19_v29  }
  0xbe   :  { %278 = vset.pattern.permute.xlu1 %v319_v30 }
  0xbf   :  { %148 = vperm.xlu1 %278, %v16_v5  }
  0xc3   :  { %279 = vset.pattern.permute.xlu1 %v317_v2 }
 0x112   :  { %v47_v32 = vpop.xlane.xlu0 %46 }
 0x113   :  { %v58_v36 = vmul.f32 0.125, %v47_v32 }
 0x115   :  { %v82_v43 = vmul.f32 %v58_v36, %v58_v36  ;;  %v94_v12 = vsub.f32 %v356_v10, %v58_v36 }
 0x116   :  { %v50_v33 = vpop.xlane.xlu1 %49  ;;  %v53_v34 = vpop.xlane.xlu0 %52 }
 0x117   :  { %v59_v35 = vmul.f32 0.125, %v50_v33  ;;  %v60_v40 = vmul.f32 0.125, %v53_v34 }
 0x119   :  { %v83_v39 = vmul.f32 %v59_v35, %v59_v35  ;;  %v84_v47 = vmul.f32 %v60_v40, %v60_v40  ;;  %v95_v4 = vsub.f32 %v360_v14, %v59_v35  ;;  %v96_v7 = vsub.f32 %v354_v9, %v60_v40 }
 0x11a   :  { %v71_v37 = vpop.xlane.xlu1 %70  ;;  %v57_v38 = vpop.xlane.xlu0 %56 }
 0x11b   :  { %v79_v41 = vmul.f32 0.125, %v71_v37  ;;  %v61_v44 = vmul.f32 0.125, %v57_v38 }
 0x11d   :  { %v87_v42 = vsub.f32 %v79_v41, %v83_v39  ;;  %v85_v54 = vmul.f32 %v61_v44, %v61_v44  ;;  %v97_v20 = vsub.f32 %v364_v16, %v61_v44 }
 0x11e   :  { %v74_v45 = vpop.xlane.xlu1 %73  ;;  %v68_v46 = vpop.xlane.xlu0 %67 }
 0x11f   :  { %v91_v48 = vmax.f32 %v87_v42, 0.0  ;;  %v80_v49 = vmul.f32 0.125, %v74_v45  ;;  %v78_v50 = vmul.f32 0.125, %v68_v46 }
 0x121   :  { %v99_v51 = vadd.f32 1e-05, %v91_v48  ;;  %v88_v52 = vsub.f32 %v80_v49, %v84_v47  ;;  %v86_v53 = vsub.f32 %v78_v50, %v82_v43 }
 0x122   :  { %v113_v55 = vpop.permute.xlu1 %112  ;;  %v77_v56 = vpop.xlane.xlu0 %76 }
 0x123   :  { %281 = vrsqrt.f32 %v99_v51  ;;  %v92_v57 = vmax.f32 %v88_v52, 0.0  ;;  %v90_v58 = vmax.f32 %v86_v53, 0.0  ;;  %v81_v59 = vmul.f32 0.125, %v77_v56 }
 0x125   :  { %v100_v60 = vadd.f32 1e-05, %v92_v57  ;;  %v98_v61 = vadd.f32 1e-05, %v90_v58  ;;  %v89_v62 = vsub.f32 %v81_v59, %v85_v54 }
 0x126   :  { %v118_v63 = vpop.permute.xlu1 %117 }
 0x127   :  { %283 = vrsqrt.f32 %v100_v60  ;;  %v93_v0 = vmax.f32 %v89_v62, 0.0 }
 0x128   :  { %285 = vrsqrt.f32 %v98_v61 }
 0x129   :  { %v101_v1 = vadd.f32 1e-05, %v93_v0 }
 0x12a   :  { %v163_v2 = vpop.permute.xlu1 %162  ;;  %v159_v8 = vpop.permute.xlu0 %158 }
 0x12b   :  { %287 = vrsqrt.f32 %v101_v1 }
 0x12d   :  { %v282_v3 = vpop.eup %281 }
 0x12e   :  { %v107_v5 = vmul.f32 %v282_v3, %v95_v4 }
 0x12f   :  { %v123_v6 = vpop.permute.xlu1 %122 }
 0x130   :  { %v131_v18 = vmul.f32 %v118_v63, %v107_v5  ;;  %v170_v19 = vmul.f32 %v159_v8, %v107_v5 }
 0x131   :  { %v284_v11 = vpop.eup %283 }
 0x132   :  { %v286_v13 = vpop.eup %285  ;;  %v108_v15 = vmul.f32 %v284_v11, %v96_v7  ;;  %v135_v27 = vsel %vm44_vm0, %v131_v18, 0.0  ;;  %v174_v28 = vsel %vm44_vm0, %v170_v19, 0.0 }
 0x133   :  { %v106_v17 = vmul.f32 %v286_v13, %v94_v12 }
 0x134   :  { %v167_v21 = vpop.permute.xlu1 %166  ;;  %v171_v14 = vmul.f32 %v163_v2, %v108_v15  ;;  %v132_v25 = vmul.f32 %v123_v6, %v108_v15 }
 0x135   :  { %v288_v22 = vpop.eup %287  ;;  %v130_v23 = vmul.f32 %v113_v55, %v106_v17  ;;  %v169_v24 = vmul.f32 %v155_v31, %v106_v17 }
 0x136   :  { %v109_v26 = vmul.f32 %v288_v22, %v97_v20  ;;  %v176_v16 = vsel %vm44_vm0, %v171_v14, 0.0  ;;  %v137_v34 = vsel %vm44_vm0, %v132_v25, 0.0 }
 0x137   :  { %v134_v9 = vsel %vm44_vm0, %v130_v23, 0.0  ;;  %v173_v10 = vsel %vm44_vm0, %v169_v24, 0.0 }
 0x138   :  { %v136_v29 = vadd.f32 %v135_v27, %v134_v9  ;;  %v175_v30 = vadd.f32 %v174_v28, %v173_v10  ;;  %v172_v32 = vmul.f32 %v167_v21, %v109_v26 }
 0x139   :  { %v128_v33 = vpop.permute.xlu1 %127 }
 0x13a   :  { %v177_v31 = vadd.f32 %v176_v16, %v175_v30  ;;  %v178_v35 = vsel %vm54_vm1, %v172_v32, 0.0  ;;  %v133_v36 = vmul.f32 %v128_v33, %v109_v26  ;;  %v138_v37 = vadd.f32 %v137_v34, %v136_v29 }
 0x13c   :  { %v179_v38 = vadd.f32 %v178_v35, %v177_v31  ;;  %v139_v39 = vsel %vm54_vm1, %v133_v36, 0.0 }
 0x13d   :  { %v140_v40 = vadd.f32 %v139_v39, %v138_v37 }
 0x13e   :  { %v180_v41 = vrot.slane %v179_v38, 4  ;;  %v149_v50 = vpop.permute.xlu1 %148 }
 0x13f   :  { %v141_v42 = vrot.slane %v140_v40, 4  ;;  %v246_v33 = vrot.slane %v149_v50, 2 }
 0x140   :  { %v181_v43 = vadd.f32 %v180_v41, %v179_v38 }
 0x141   :  { %v142_v44 = vadd.f32 %v141_v42, %v140_v40 }
 0x142   :  { %v182_v45 = vrot.slane %v181_v43, 2 }
 0x143   :  { %v143_v46 = vrot.slane %v142_v44, 2 }
 0x144   :  { %v183_v47 = vadd.f32 %v182_v45, %v181_v43 }
 0x145   :  { %v144_v48 = vadd.f32 %v143_v46, %v142_v44 }
 0x146   :  { %v184_v49 = vrot.slane %v183_v47, 1 }
 0x147   :  { %v145_v51 = vrot.slane %v144_v48, 1 }
 0x148   :  { %v185_v52 = vadd.f32 %v184_v49, %v183_v47 }
 0x149   :  { %v146_v53 = vadd.f32 %v145_v51, %v144_v48 }
 0x14a   :  { %v186_v54 = vadd.f32 %v185_v52, %v149_v50 }
 0x14b   :  { %v151_v55 = vadd.f32 %v149_v50, %v146_v53 }
 0x14c   :  { %v187_v56 = vmax.f32 %v186_v54, 0.0 }
 0x14d   :  { %v152_v57 = vmax.f32 %v151_v55, 0.0 }
 0x14e   :  { %217 = vperm.xlu1 %279, %v187_v56  }
 0x14f   :  { %190 = vperm.xlu0 %280, %v152_v57  }
 0x1cd   :  { %v218_v58 = vpop.permute.xlu1 %217 }
 0x1ce   :  { %v220_v59 = vsub.f32 %v187_v56, %v218_v58  ;;  %v191_v60 = vpop.permute.xlu0 %190 }
 0x1cf   :  { %v193_v61 = vsub.f32 %v152_v57, %v191_v60 }
 0x1d0   :  { %v222_v62 = vsel %vm221_vm2, %v220_v59, 0.0  ;;  %v226_v63 = vmul.f32 %v220_v59, %v220_v59 }
 0x1d1   :  { %223 = vadd.xlane.f32.xlu1 %v222_v62  ;;  %v195_v0 = vsel %vm194_vm3, %v193_v61, 0.0  ;;  %v199_v1 = vmul.f32 %v193_v61, %v193_v61 }
 0x1d2   :  { %196 = vadd.xlane.f32.xlu0 %v195_v0  ;;  %v227_v2 = vsel %vm221_vm2, %v226_v63, 0.0 }
 0x1d3   :  { %v200_v3 = vsel %vm194_vm3, %v199_v1, 0.0 }
 0x1d5   :  { %228 = vadd.xlane.f32.xlu1 %v227_v2 }
 0x1d6   :  { %201 = vadd.xlane.f32.xlu0 %v200_v3 }
 0x25e   :  { %v224_v4 = vpop.xlane.xlu1 %223 }
 0x25f   :  { %v225_v5 = vmul.f32 0.125, %v224_v4  ;;  %v197_v6 = vpop.xlane.xlu0 %196 }
 0x260   :  { %v198_v7 = vmul.f32 0.125, %v197_v6 }
 0x261   :  { %v231_v11 = vmul.f32 %v225_v5, %v225_v5  ;;  %v234_v24 = vsub.f32 %v220_v59, %v225_v5 }
 0x262   :  { %v229_v8 = vpop.xlane.xlu1 %228  ;;  %v204_v15 = vmul.f32 %v198_v7, %v198_v7  ;;  %v207_v25 = vsub.f32 %v193_v61, %v198_v7 }
 0x263   :  { %v230_v12 = vmul.f32 0.125, %v229_v8  ;;  %v202_v13 = vpop.xlane.xlu0 %201 }
 0x264   :  { %v203_v17 = vmul.f32 0.125, %v202_v13 }
 0x265   :  { %v232_v18 = vsub.f32 %v230_v12, %v231_v11 }
 0x266   :  { %v205_v19 = vsub.f32 %v203_v17, %v204_v15 }
 0x267   :  { %v233_v20 = vmax.f32 %v232_v18, 0.0 }
 0x268   :  { %v206_v21 = vmax.f32 %v205_v19, 0.0 }
 0x269   :  { %v235_v22 = vadd.f32 1e-05, %v233_v20 }
 0x26a   :  { %v208_v23 = vadd.f32 1e-05, %v206_v21 }
 0x26b   :  { %289 = vrsqrt.f32 %v235_v22 }
 0x26c   :  { %291 = vrsqrt.f32 %v208_v23 }
 0x275   :  { %v290_v14 = vpop.eup %289 }
 0x276   :  { %v292_v26 = vpop.eup %291  ;;  %v237_v9 = vmul.f32 %v290_v14, %v234_v24 }
 0x277   :  { %v210_v27 = vmul.f32 %v292_v26, %v207_v25 }
 0x278   :  { %v239_v10 = vrot.slane %v237_v9, 6 }
 0x279   :  { %v212_v28 = vrot.slane %v210_v27, 6 }
 0x27a   :  { %v241_v29 = vmul.f32 %v239_v10, %v149_v50 }
 0x27b   :  { %v214_v30 = vmul.f32 %v212_v28, %v149_v50 }
 0x27c   :  { %v243_v32 = vrot.slane %v241_v29, 1 }
 0x27e   :  { %v245_v16 = vadd.f32 %v243_v32, %v214_v30 }
 0x280   :  { %v248_v34 = vadd.f32 %v246_v33, %v245_v16 }
 0x282   :  { %250 = vst.msk [vmem:[#allocation2 - $0x2] sm:$0x4] %vm249_vm4, %v248_v34 }
 0x283   :  { %304 = shalt.err (!%p301_p4)
}
 0x284   :  { %s305_s29 = scalar_lea.hbm %s421_s2, 16 }
 0x285   :  { %p306_p5 = scmp.ne.s32.totalorder %s421_s2, %s305_s29  ;;  %p309_p6 = scmp.lt.u32.totalorder %s305_s29, %s421_s2 }
 0x287   :  { %p311_p7 = pnand %p309_p6, %p306_p5 }
 0x289   :  { %314 = shalt.err (!%p311_p7)
}
 0x28a   :  { %260 = dma.vmem_to_hbm [thread:$0]  %s258_s24, 16, %s421_s2, [#allocation3]  }
 0x28b   :  { %315 = dma.done.wait [#allocation3], 16  }
 0x28c   :  { %316 = vsyncadd [#allocation3], 4294967280 }
 0x28d   :  { %264 = vsyncpa [#allocation3], 1 }

</bundles_post_ra>
